<compile_context>
chip_gen: v7x
topology: tpu7x:2x2x1
jax: 0.10.0
libtpu: 0.0.40
codegen_flags: <defaults>
</compile_context>

<pallas_src>
import functools

import jax
import jax.numpy as jnp
from jax.experimental import pallas as pl
from jax.experimental.pallas import tpu as pltpu


def _cv_layernorm_kernel(xr_ref, xi_ref, gamma_ref, beta_ref, o_ref, *, eps):
    xr = xr_ref[...]                      # [T, F] float32
    xi = xi_ref[...]                      # [T, F] float32
    f = xr.shape[-1]
    inv_f = jnp.float32(1.0 / f)

    def _normalize(v):
        mean = jnp.sum(v, axis=-1, keepdims=True) * inv_f
        c = v - mean
        var = jnp.sum(c * c, axis=-1, keepdims=True) * inv_f   # biased var (PyTorch LN)
        return c * jax.lax.rsqrt(var + eps)                    # EUP rsqrt

    # One lane-dense [T, 2F] slab: [ real_hat | imag_hat ], single full-block store.
    xhat = jnp.concatenate([_normalize(xr), _normalize(xi)], axis=-1)
    o_ref[...] = (xhat * gamma_ref[...] + beta_ref[...]).astype(o_ref.dtype)


def cv_layer_norm(x, gamma_real, beta_real, gamma_imag, beta_imag,
                  eps=1e-5, row_tile=256):
    """x: complex64 array [..., F]. Returns complex64 array of the same shape."""
    orig_shape = x.shape
    F = orig_shape[-1]

    xr = jnp.real(x).astype(jnp.float32).reshape(-1, F)
    xi = jnp.imag(x).astype(jnp.float32).reshape(-1, F)
    N = xr.shape[0]

    # Row tiling: full problem in one step if small, else 256-row tiles (pad rows).
    T = row_tile if N >= row_tile else N
    n_tiles = pl.cdiv(N, T)
    N_pad = n_tiles * T
    if N_pad != N:
        pad = N_pad - N
        xr = jnp.pad(xr, ((0, pad), (0, 0)))
        xi = jnp.pad(xi, ((0, pad), (0, 0)))

    # Pack affine params for real|imag halves of the concatenated output slab.
    gamma = jnp.concatenate(
        [gamma_real.astype(jnp.float32), gamma_imag.astype(jnp.float32)]
    ).reshape(1, 2 * F)
    beta = jnp.concatenate(
        [beta_real.astype(jnp.float32), beta_imag.astype(jnp.float32)]
    ).reshape(1, 2 * F)

    out = pl.pallas_call(
        functools.partial(_cv_layernorm_kernel, eps=eps),
        out_shape=jax.ShapeDtypeStruct((N_pad, 2 * F), jnp.float32),
        grid_spec=pltpu.PrefetchScalarGridSpec(
            num_scalar_prefetch=0,
            grid=(n_tiles,),
            in_specs=[
                pl.BlockSpec((T, F), lambda i: (i, 0)),        # x real rows
                pl.BlockSpec((T, F), lambda i: (i, 0)),        # x imag rows
                pl.BlockSpec((1, 2 * F), lambda i: (0, 0)),    # gamma (resident)
                pl.BlockSpec((1, 2 * F), lambda i: (0, 0)),    # beta  (resident)
            ],
            out_specs=pl.BlockSpec((T, 2 * F), lambda i: (i, 0)),
        ),
        compiler_params=pltpu.CompilerParams(
            dimension_semantics=("parallel",)),
    )(xr, xi, gamma, beta)

    out = out[:N]
    out_r = out[:, :F].reshape(orig_shape)
    out_i = out[:, F:].reshape(orig_shape)
    return (out_r + 1j * out_i).astype(jnp.complex64)


def _reference(x, gamma_real, beta_real, gamma_imag, beta_imag, eps=1e-5):
    def ln(v, g, b):
        m = jnp.mean(v, axis=-1, keepdims=True)
        var = jnp.mean((v - m) ** 2, axis=-1, keepdims=True)
        return (v - m) / jnp.sqrt(var + eps) * g + b

    out_r = ln(jnp.real(x).astype(jnp.float32), gamma_real, beta_real)
    out_i = ln(jnp.imag(x).astype(jnp.float32), gamma_imag, beta_imag)
    return (out_r + 1j * out_i).astype(jnp.complex64)


if __name__ == "__main__":
    key = jax.random.PRNGKey(0)
    B, S, F = 2, 8, 32
    k1, k2, k3, k4, k5, k6 = jax.random.split(key, 6)

    x = (jax.random.normal(k1, (B, S, F), jnp.float32)
         + 1j * jax.random.normal(k2, (B, S, F), jnp.float32)).astype(jnp.complex64)

    gamma_real = jax.random.normal(k3, (F,), jnp.float32) * 0.1 + 1.0
    beta_real = jax.random.normal(k4, (F,), jnp.float32) * 0.1
    gamma_imag = jax.random.normal(k5, (F,), jnp.float32) * 0.1 + 1.0
    beta_imag = jax.random.normal(k6, (F,), jnp.float32) * 0.1

    out = cv_layer_norm(x, gamma_real, beta_real, gamma_imag, beta_imag)
    out = jax.block_until_ready(out)

    ref = _reference(x, gamma_real, beta_real, gamma_imag, beta_imag)
    assert out.shape == (B, S, F)
    assert out.dtype == jnp.complex64
    assert jnp.allclose(out, ref, atol=1e-4, rtol=1e-4), "mismatch vs reference"

    print("KERNEL_OK")
</pallas_src>

<mosaic_0001>
module attributes {stable_mosaic.version = 11 : i64} {
  func.func @_cv_layernorm_kernel(%arg0: i32, %arg1: memref<16x32xf32, #tpu.memory_space<vmem>>, %arg2: memref<16x32xf32, #tpu.memory_space<vmem>>, %arg3: memref<1x64xf32, #tpu.memory_space<vmem>>, %arg4: memref<1x64xf32, #tpu.memory_space<vmem>>, %arg5: memref<16x64xf32, #tpu.memory_space<vmem>>) attributes {dimension_semantics = [#tpu.dimension_semantics<parallel>], iteration_bounds = array<i64: 1>, scalar_prefetch = 0 : i64, scratch_operands = 0 : i64, tpu.core_type = #tpu.core_type<tc>, window_params = [{transform_indices = @transform_0, window_bounds = array<i64: 16, 32>}, {transform_indices = @transform_1, window_bounds = array<i64: 16, 32>}, {pipeline_mode = #tpu.pipeline_mode<synchronous>, transform_indices = @transform_2, window_bounds = array<i64: 1, 64>}, {pipeline_mode = #tpu.pipeline_mode<synchronous>, transform_indices = @transform_3, window_bounds = array<i64: 1, 64>}, {transform_indices = @transform_4, window_bounds = array<i64: 16, 64>}]} {
    %c0 = arith.constant 0 : index
    %c0_0 = arith.constant 0 : index
    %0 = vector.load %arg1[%c0, %c0_0] : memref<16x32xf32, #tpu.memory_space<vmem>>, vector<16x32xf32>
    %c0_1 = arith.constant 0 : index
    %c0_2 = arith.constant 0 : index
    %1 = vector.load %arg2[%c0_1, %c0_2] : memref<16x32xf32, #tpu.memory_space<vmem>>, vector<16x32xf32>
    %cst = arith.constant dense<0.000000e+00> : vector<16xf32>
    %2 = vector.multi_reduction <add>, %0, %cst [1] : vector<16x32xf32> to vector<16xf32>
    %3 = vector.shape_cast %2 : vector<16xf32> to vector<16x1xf32>
    %cst_3 = arith.constant 3.125000e-02 : f32
    %4 = vector.broadcast %cst_3 : f32 to vector<16x1xf32>
    %5 = arith.mulf %3, %4 : vector<16x1xf32>
    %6 = vector.broadcast %5 : vector<16x1xf32> to vector<16x32xf32>
    %7 = arith.subf %0, %6 : vector<16x32xf32>
    %8 = arith.mulf %7, %7 : vector<16x32xf32>
    %cst_4 = arith.constant dense<0.000000e+00> : vector<16xf32>
    %9 = vector.multi_reduction <add>, %8, %cst_4 [1] : vector<16x32xf32> to vector<16xf32>
    %10 = vector.shape_cast %9 : vector<16xf32> to vector<16x1xf32>
    %cst_5 = arith.constant 3.125000e-02 : f32
    %11 = vector.broadcast %cst_5 : f32 to vector<16x1xf32>
    %12 = arith.mulf %10, %11 : vector<16x1xf32>
    %cst_6 = arith.constant 9.99999974E-6 : f32
    %13 = vector.broadcast %cst_6 : f32 to vector<16x1xf32>
    %14 = arith.addf %12, %13 : vector<16x1xf32>
    %15 = math.rsqrt %14 : vector<16x1xf32>
    %16 = vector.broadcast %15 : vector<16x1xf32> to vector<16x32xf32>
    %17 = arith.mulf %7, %16 : vector<16x32xf32>
    %cst_7 = arith.constant dense<0.000000e+00> : vector<16xf32>
    %18 = vector.multi_reduction <add>, %1, %cst_7 [1] : vector<16x32xf32> to vector<16xf32>
    %19 = vector.shape_cast %18 : vector<16xf32> to vector<16x1xf32>
    %cst_8 = arith.constant 3.125000e-02 : f32
    %20 = vector.broadcast %cst_8 : f32 to vector<16x1xf32>
    %21 = arith.mulf %19, %20 : vector<16x1xf32>
    %22 = vector.broadcast %21 : vector<16x1xf32> to vector<16x32xf32>
    %23 = arith.subf %1, %22 : vector<16x32xf32>
    %24 = arith.mulf %23, %23 : vector<16x32xf32>
    %cst_9 = arith.constant dense<0.000000e+00> : vector<16xf32>
    %25 = vector.multi_reduction <add>, %24, %cst_9 [1] : vector<16x32xf32> to vector<16xf32>
    %26 = vector.shape_cast %25 : vector<16xf32> to vector<16x1xf32>
    %cst_10 = arith.constant 3.125000e-02 : f32
    %27 = vector.broadcast %cst_10 : f32 to vector<16x1xf32>
    %28 = arith.mulf %26, %27 : vector<16x1xf32>
    %cst_11 = arith.constant 9.99999974E-6 : f32
    %29 = vector.broadcast %cst_11 : f32 to vector<16x1xf32>
    %30 = arith.addf %28, %29 : vector<16x1xf32>
    %31 = math.rsqrt %30 : vector<16x1xf32>
    %32 = vector.broadcast %31 : vector<16x1xf32> to vector<16x32xf32>
    %33 = arith.mulf %23, %32 : vector<16x32xf32>
    %34 = tpu.concatenate %17, %33 in 1 : vector<16x32xf32>, vector<16x32xf32> -> vector<16x64xf32>
    %c0_12 = arith.constant 0 : index
    %c0_13 = arith.constant 0 : index
    %35 = vector.load %arg3[%c0_12, %c0_13] : memref<1x64xf32, #tpu.memory_space<vmem>>, vector<1x64xf32>
    %36 = vector.broadcast %35 : vector<1x64xf32> to vector<16x64xf32>
    %37 = arith.mulf %34, %36 : vector<16x64xf32>
    %c0_14 = arith.constant 0 : index
    %c0_15 = arith.constant 0 : index
    %38 = vector.load %arg4[%c0_14, %c0_15] : memref<1x64xf32, #tpu.memory_space<vmem>>, vector<1x64xf32>
    %39 = vector.broadcast %38 : vector<1x64xf32> to vector<16x64xf32>
    %40 = arith.addf %37, %39 : vector<16x64xf32>
    %c0_16 = arith.constant 0 : index
    %c0_17 = arith.constant 0 : index
    %41 = vector.load %arg5[%c0_16, %c0_17] : memref<16x64xf32, #tpu.memory_space<vmem>>, vector<16x64xf32>
    tpu.vector_store %arg5[%c0_16, %c0_17], %40 {strides = array<i32>} : memref<16x64xf32, #tpu.memory_space<vmem>>, vector<16x64xf32>,
    return
  }
  func.func @transform_0(%arg0: i32) -> (i32, i32) {
    %c0_i32 = arith.constant 0 : i32
    %c0_i32_0 = arith.constant 0 : i32
    return %arg0, %c0_i32 : i32, i32
  }
  func.func @transform_1(%arg0: i32) -> (i32, i32) {
    %c0_i32 = arith.constant 0 : i32
    %c0_i32_0 = arith.constant 0 : i32
    return %arg0, %c0_i32 : i32, i32
  }
  func.func @transform_2(%arg0: i32) -> (i32, i32) {
    %c0_i32 = arith.constant 0 : i32
    %c0_i32_0 = arith.constant 0 : i32
    %c0_i32_1 = arith.constant 0 : i32
    return %c0_i32, %c0_i32_0 : i32, i32
  }
  func.func @transform_3(%arg0: i32) -> (i32, i32) {
    %c0_i32 = arith.constant 0 : i32
    %c0_i32_0 = arith.constant 0 : i32
    %c0_i32_1 = arith.constant 0 : i32
    return %c0_i32, %c0_i32_0 : i32, i32
  }
  func.func @transform_4(%arg0: i32) -> (i32, i32) {
    %c0_i32 = arith.constant 0 : i32
    %c0_i32_0 = arith.constant 0 : i32
    return %arg0, %c0_i32 : i32, i32
  }
}

</mosaic_0001>

<bundles_post_ra>
// kernel: tpu_custom_call.1
= control target key start
LH: loop header
LB: loop body
LE: loop exit
PB: predicated region body
PF: predicated region fallthrough
CT: control target
= control target key end

     0   :  { %9 = vsyncpa [#allocation3], 0  ;;  %s332_s0 = inlined_call_operand.hbm [shape: f32[16,32], index: 0, kind: input, shape index: {}]   ;;  %s333_s1 = inlined_call_operand.hbm [shape: f32[16,32], index: 1, kind: input, shape index: {}]   ;;  %s334_s2 = inlined_call_operand.vmem [shape: f32[1,64], index: 2, kind: input, shape index: {}]   ;;  %s335_s3 = inlined_call_operand.vmem [shape: f32[1,64], index: 3, kind: input, shape index: {}]   ;;  %s336_s4 = inlined_call_operand.hbm [shape: f32[16,64], index: 4, kind: output, shape index: {}]  }
   0x1   :  { %10 = vsyncpa [#allocation6], 0 }
   0x2   :  { %11 = vsyncpa [#allocation4], 0  ;;  %s240_s15 = smov [#allocation2]   ;;  %s168_s19 = scalar_lea.hbm %s332_s0, 256 }
   0x3   :  { %s17_s16 = sshll.u32 %s240_s15, 4  ;;  %p169_p0 = scmp.ne.s32.totalorder %s332_s0, %s168_s19  ;;  %s18_s16 = int_to_ptr.vmem [resolvable:$true] %s17_s16 }
   0x4   :  { %p172_p1 = scmp.lt.u32.totalorder %s168_s19, %s332_s0 }
   0x6   :  { %p174_p2 = pnand %p172_p1, %p169_p0 }
   0x8   :  { %177 = shalt.err (!%p174_p2)
}
   0x9   :  { %s178_s24 = scalar_lea.vmem %s18_s16, 256  ;;  %p183_p4 = scmp.lt.s32.totalorder %s18_s16, %s18_s16 }
   0xa   :  { %p179_p3 = scmp.ne.s32.totalorder %s18_s16, %s178_s24  ;;  %p184_p5 = scmp.lt.s32.totalorder %s178_s24, %s178_s24 }
   0xc   :  { %p185_p6 = por %p184_p5, %p183_p4 }
   0xe   :  { %p186_p7 = pnand %p185_p6, %p179_p3 }
  0x10   :  { %189 = shalt.err (!%p186_p7)
}
  0x11   :  { %s241_s25 = smov 128   ;;  %s242_s26 = smov 8  }
  0x12   :  { %23 = dma.hbm_to_vmem [thread:$0]  %s332_s0, 256, %s18_s16, [#allocation3], %s241_s25, %s241_s25, %s242_s26  }
  0x13   :  { %s243_s29 = smov [#allocation5]   ;;  %s190_s7 = scalar_lea.hbm %s333_s1, 256 }
  0x14   :  { %s29_s30 = sshll.u32 %s243_s29, 4  ;;  %p191_p8 = scmp.ne.s32.totalorder %s333_s1, %s190_s7  ;;  %s30_s30 = int_to_ptr.vmem [resolvable:$true] %s29_s30 }
  0x15   :  { %p194_p9 = scmp.lt.u32.totalorder %s190_s7, %s333_s1 }
  0x17   :  { %p196_p10 = pnand %p194_p9, %p191_p8 }
  0x19   :  { %199 = shalt.err (!%p196_p10)
}
  0x1a   :  { %s200_s12 = scalar_lea.vmem %s30_s30, 256  ;;  %p205_p12 = scmp.lt.s32.totalorder %s30_s30, %s30_s30 }
  0x1b   :  { %p201_p11 = scmp.ne.s32.totalorder %s30_s30, %s200_s12  ;;  %p206_p13 = scmp.lt.s32.totalorder %s200_s12, %s200_s12 }
  0x1d   :  { %p207_p0 = por %p206_p13, %p205_p12 }
  0x1f   :  { %p208_p1 = pnand %p207_p0, %p201_p11 }
  0x21   :  { %211 = shalt.err (!%p208_p1)
}
  0x22   :  { %35 = dma.hbm_to_vmem [thread:$0]  %s333_s1, 256, %s30_s30, [#allocation6], %s241_s25, %s241_s25, %s242_s26  }
  0x23   :  { %234 = dma.done.wait [#allocation3], 256  }
  0x24   :  { %235 = vsyncadd [#allocation3], 4294967040 }
  0x25   :  { %236 = dma.done.wait [#allocation6], 256  }
  0x26   :  { %237 = vsyncadd [#allocation6], 4294967040  ;;  %vm50_vm0 = vcmask 261120   ;;  %v48_v0 = vld [vmem:[#allocation5] sm:$0xff]  ;;  %v49_v1 = vld [vmem:[#allocation5 + $0x8] sm:$0xff]  ;;  %s244_s1 = smov 32  }
  0x27   :  { %v46_v2 = vld [vmem:[#allocation2] sm:$0xff]  ;;  %v77_v3 = vsel %vm50_vm0, %v48_v0, 0.0  ;;  %v47_v5 = vld [vmem:[#allocation2 + $0x8] sm:$0xff]  ;;  %v80_v6 = vsel %vm50_vm0, %v49_v1, 0.0  ;;  %vm131_vm1 = vcmask 523264   ;;  %s245_s18 = smov [#allocation7]  }
  0x28   :  { %v51_v4 = vsel %vm50_vm0, %v46_v2, 0.0  ;;  %78 = vadd.xlane.f32.xlu0 %v77_v3  ;;  %v54_v7 = vsel %vm50_vm0, %v47_v5, 0.0  ;;  %v152_v46 = vld [vmem:[%s334_s2] ss:$0 sm:$0xff]  ;;  %s139_s19 = sshll.u32 %s245_s18, 4  ;;  %s140_s19 = int_to_ptr.vmem [resolvable:$true] %s139_s19 }
  0x29   :  { %52 = vadd.xlane.f32.xlu1 %v51_v4  ;;  %v153_v49 = vld [vmem:[%s335_s3] ss:$0 sm:$0xff]  ;;  %s212_s2 = scalar_lea.vmem %s140_s19, 256  ;;  %p217_p3 = scmp.lt.s32.totalorder %s140_s19, %s140_s19 }
  0x2a   :  { %p213_p2 = scmp.ne.s32.totalorder %s140_s19, %s212_s2  ;;  %p218_p4 = scmp.lt.s32.totalorder %s212_s2, %s212_s2 }
  0x2c   :  { %81 = vadd.xlane.f32.xlu0 %v80_v6  ;;  %p219_p5 = por %p218_p4, %p217_p3 }
  0x2d   :  { %55 = vadd.xlane.f32.xlu1 %v54_v7 }
  0x2e   :  { %p220_p6 = pnand %p219_p5, %p213_p2 }
  0xb5   :  { %v79_v8 = vpop.xlane.xlu0 %78 }
  0xb6   :  { %v53_v9 = vpop.xlane.xlu1 %52  ;;  %v83_v10 = vmul.f32 0.03125, %v79_v8 }
  0xb7   :  { %v57_v11 = vmul.f32 0.03125, %v53_v9 }
  0xb8   :  { %v85_v12 = vsub.f32 %v48_v0, %v83_v10 }
  0xb9   :  { %v59_v13 = vsub.f32 %v46_v2, %v57_v11  ;;  %v82_v14 = vpop.xlane.xlu0 %81 }
  0xba   :  { %v56_v15 = vpop.xlane.xlu1 %55  ;;  %v84_v16 = vmul.f32 0.03125, %v82_v14  ;;  %v87_v17 = vmul.f32 %v85_v12, %v85_v12 }
  0xbb   :  { %v58_v18 = vmul.f32 0.03125, %v56_v15  ;;  %v61_v19 = vmul.f32 %v59_v13, %v59_v13 }
  0xbc   :  { %v86_v20 = vsub.f32 %v49_v1, %v84_v16  ;;  %v89_v21 = vsel %vm50_vm0, %v87_v17, 0.0 }
  0xbd   :  { %v60_v22 = vsub.f32 %v47_v5, %v58_v18  ;;  %90 = vadd.xlane.f32.xlu0 %v89_v21  ;;  %v63_v24 = vsel %vm50_vm0, %v61_v19, 0.0 }
  0xbe   :  { %v88_v23 = vmul.f32 %v86_v20, %v86_v20 }
  0xbf   :  { %v62_v25 = vmul.f32 %v60_v22, %v60_v22 }
  0xc0   :  { %v92_v26 = vsel %vm50_vm0, %v88_v23, 0.0 }
  0xc1   :  { %93 = vadd.xlane.f32.xlu1 %v92_v26  ;;  %64 = vadd.xlane.f32.xlu0 %v63_v24  ;;  %v66_v27 = vsel %vm50_vm0, %v62_v25, 0.0 }
  0xc5   :  { %67 = vadd.xlane.f32.xlu1 %v66_v27 }
 0x14a   :  { %v91_v28 = vpop.xlane.xlu0 %90 }
 0x14b   :  { %v95_v29 = vmul.f32 0.03125, %v91_v28 }
 0x14d   :  { %v97_v30 = vadd.f32 1e-05, %v95_v29 }
 0x14e   :  { %v94_v31 = vpop.xlane.xlu1 %93  ;;  %v65_v38 = vpop.xlane.xlu0 %64 }
 0x14f   :  { %160 = vrsqrt.f32 %v97_v30  ;;  %v96_v32 = vmul.f32 0.03125, %v94_v31  ;;  %v69_v39 = vmul.f32 0.03125, %v65_v38 }
 0x151   :  { %v98_v33 = vadd.f32 1e-05, %v96_v32  ;;  %v71_v41 = vadd.f32 1e-05, %v69_v39 }
 0x152   :  { %v68_v40 = vpop.xlane.xlu1 %67 }
 0x153   :  { %162 = vrsqrt.f32 %v98_v33  ;;  %v70_v42 = vmul.f32 0.03125, %v68_v40 }
 0x154   :  { %164 = vrsqrt.f32 %v71_v41 }
 0x155   :  { %v72_v43 = vadd.f32 1e-05, %v70_v42 }
 0x157   :  { %166 = vrsqrt.f32 %v72_v43 }
 0x159   :  { %v161_v34 = vpop.eup %160 }
 0x15a   :  { %v101_v35 = vmul.f32 %v161_v34, %v85_v12 }
 0x15c   :  { %105 = vrot.lane.b32.xlu0 %v101_v35, %s244_s1 }
 0x15d   :  { %v163_v36 = vpop.eup %162 }
 0x15e   :  { %v102_v37 = vmul.f32 %v163_v36, %v86_v20  ;;  %v165_v44 = vpop.eup %164 }
 0x15f   :  { %v75_v45 = vmul.f32 %v165_v44, %v59_v13 }
 0x160   :  { %107 = vrot.lane.b32.xlu1 %v102_v37, %s244_s1 }
 0x161   :  { %v167_v48 = vpop.eup %166 }
 0x162   :  { %v76_v53 = vmul.f32 %v167_v48, %v60_v22 }
 0x1ce   :  { %v106_v47 = vpop.permute.xlu0 %105 }
 0x1cf   :  { %v111_v50 = vsel %vm50_vm0, %v75_v45, %v106_v47 }
 0x1d0   :  { %v120_v51 = vmul.f32 %v152_v46, %v111_v50 }
 0x1d2   :  { %v129_v52 = vadd.f32 %v153_v49, %v120_v51  ;;  %v108_v54 = vpop.permute.xlu1 %107 }
 0x1d3   :  { %v112_v55 = vsel %vm50_vm0, %v76_v53, %v108_v54 }
 0x1d4   :  { %132 = vst.msk [vmem:[#allocation7] sm:$0xff] %vm131_vm1, %v129_v52  ;;  %v121_v56 = vmul.f32 %v152_v46, %v112_v55 }
 0x1d6   :  { %v130_v57 = vadd.f32 %v153_v49, %v121_v56 }
 0x1d8   :  { %133 = vst.msk [vmem:[#allocation7 + $0x8] sm:$0xff] %vm131_vm1, %v130_v57 }
 0x1d9   :  { %223 = shalt.err (!%p220_p6)
}
 0x1da   :  { %s224_s21 = scalar_lea.hbm %s336_s4, 256 }
 0x1db   :  { %p225_p7 = scmp.ne.s32.totalorder %s336_s4, %s224_s21  ;;  %p228_p8 = scmp.lt.u32.totalorder %s224_s21, %s336_s4 }
 0x1dd   :  { %p230_p9 = pnand %p228_p8, %p225_p7 }
 0x1df   :  { %233 = shalt.err (!%p230_p9)
}
 0x1e0   :  { %145 = dma.vmem_to_hbm [thread:$0]  %s140_s19, 256, %s336_s4, [#allocation4], %s241_s25, %s241_s25, %s242_s26  }
 0x1e1   :  { %238 = dma.done.wait [#allocation4], 256  }
 0x1e2   :  { %239 = vsyncadd [#allocation4], 4294967040 }
 0x1e3   :  { %149 = vsyncpa [#allocation3], 1 }
 0x1e4   :  { %150 = vsyncpa [#allocation6], 1 }
 0x1e5   :  { %151 = vsyncpa [#allocation4], 1 }

</bundles_post_ra>
